<compile_context>
chip_gen: v5e
topology: v5e:2x2
jax: 0.10.0
libtpu: 0.0.40
codegen_flags: <defaults>
</compile_context>

<pallas_src>
import jax
import jax.numpy as jnp
from jax.experimental import pallas as pl
from jax.experimental.pallas import tpu as pltpu


def _concept_conv1x1_kernel(x_ref, w_ref, b_ref, o_ref):
    # x_ref: (tb, C, HW)   w_ref: (K, C)   b_ref: (K, 1)   o_ref: (tb, K, HW)
    w = w_ref[...]
    b = b_ref[...]
    for i in range(x_ref.shape[0]):          # tb is small & static -> unrolled MXU matmuls
        acc = jnp.dot(w, x_ref[i], preferred_element_type=jnp.float32)
        o_ref[i] = (acc + b).astype(o_ref.dtype)


def ccnn_forward(feats_nchw, conv_w, conv_b, *, compute_dtype=None,
                 max_batches_per_block=8, max_block_bytes=4 * 1024 * 1024):
    """CCNN.forward (post conv_base): 1x1 concept conv + (eval-mode) dropout.

    feats_nchw: (B, C, H, W) float32 — conv-base output, NCHW (PyTorch layout)
    conv_w:     (K, C, 1, 1) float32 — nn.Conv2d(C, K, kernel_size=1).weight
    conv_b:     (K,)         float32 — nn.Conv2d bias
    compute_dtype: optional (e.g. jnp.bfloat16): cast x/w before the dot (f32 accumulation
                   kept) — recommended on v6e/v7x where the MXU is bf16-native.
    returns:    (B, K, H, W) float32
    """
    B, C, H, W = feats_nchw.shape
    K = conv_w.shape[0]
    HW = H * W

    x3 = feats_nchw.reshape(B, C, HW)               # free reshape (contiguous NCHW)
    w2 = conv_w.reshape(K, C)
    b2 = conv_b.reshape(K, 1).astype(jnp.float32)
    if compute_dtype is not None:
        x3 = x3.astype(compute_dtype)
        w2 = w2.astype(compute_dtype)

    # Batches per block: big enough to amortize per-step overhead, capped for VMEM
    # (v7x has only 64 MiB physical), and leaving a grid of >= 2 for megacore sharding.
    bytes_per_batch = C * HW * x3.dtype.itemsize
    tb = max(1, min(max_batches_per_block, max_block_bytes // max(bytes_per_batch, 1)))
    if B >= 2:
        tb = min(tb, pl.cdiv(B, 2))
    tb = min(tb, B)
    grid = (pl.cdiv(B, tb),)

    cost = pl.CostEstimate(
        flops=2 * B * K * C * HW,
        transcendentals=0,
        bytes_accessed=(x3.size * x3.dtype.itemsize
                        + w2.size * w2.dtype.itemsize
                        + b2.size * b2.dtype.itemsize
                        + B * K * HW * 4),
    )

    out3 = pl.pallas_call(
        _concept_conv1x1_kernel,
        out_shape=jax.ShapeDtypeStruct((B, K, HW), jnp.float32),
        grid_spec=pltpu.PrefetchScalarGridSpec(
            num_scalar_prefetch=0,
            grid=grid,
            in_specs=[
                pl.BlockSpec((tb, C, HW), lambda i: (i, 0, 0)),  # tb batches of the fmap
                pl.BlockSpec((K, C), lambda i: (0, 0)),          # weight, resident
                pl.BlockSpec((K, 1), lambda i: (0, 0)),          # bias, resident
            ],
            out_specs=pl.BlockSpec((tb, K, HW), lambda i: (i, 0, 0)),
        ),
        compiler_params=pltpu.CompilerParams(
            dimension_semantics=("parallel",),
        ),
        cost_estimate=cost,
    )(x3, w2, b2)

    # Dropout: identity in eval/inference mode.
    return out3.reshape(B, K, H, W)                 # free reshape back to NCHW


if __name__ == "__main__":
    def ref_conv1x1(feats, w, b):
        K, C = w.shape[0], w.shape[1]
        return (jnp.einsum("bchw,kc->bkhw", feats, w.reshape(K, C))
                + b[None, :, None, None])

    key = jax.random.PRNGKey(0)

    # Small stand-ins consistent with the module:
    #   conv_base_out_fms 512 -> 128 ; num_concepts -> 16 ; spatial 8x8 ; batch 2
    B, C, H, W, K = 2, 128, 8, 8, 16
    k_x, k_w, k_b = jax.random.split(key, 3)
    feats = jax.random.normal(k_x, (B, C, H, W), dtype=jnp.float32)
    conv_w = jax.random.normal(k_w, (K, C, 1, 1), dtype=jnp.float32) * (1.0 / jnp.sqrt(C))
    conv_b = jax.random.normal(k_b, (K,), dtype=jnp.float32) * 0.01

    out = jax.block_until_ready(ccnn_forward(feats, conv_w, conv_b))
    ref = ref_conv1x1(feats, conv_w, conv_b)
    assert out.shape == (B, K, H, W)
    assert jnp.allclose(out, ref, atol=1e-4, rtol=1e-4), "mismatch vs reference (8x8)"

    # Real VGG19 spatial size (7x7, HW=49) and an odd batch: exercises the pl.cdiv /
    # partial-last-block path that the previous version's assert rejected.
    B2, H2, W2 = 3, 7, 7
    feats7 = jax.random.normal(jax.random.PRNGKey(1), (B2, C, H2, W2), dtype=jnp.float32)
    out7 = jax.block_until_ready(ccnn_forward(feats7, conv_w, conv_b))
    ref7 = ref_conv1x1(feats7, conv_w, conv_b)
    assert out7.shape == (B2, K, H2, W2)
    assert jnp.allclose(out7, ref7, atol=1e-4, rtol=1e-4), "mismatch vs reference (7x7)"

    print("KERNEL_OK")
</pallas_src>

<mosaic_0001>
module attributes {stable_mosaic.version = 11 : i64} {
  func.func @_concept_conv1x1_kernel(%arg0: i32, %arg1: memref<1x128x64xf32, #tpu.memory_space<vmem>>, %arg2: memref<16x128xf32, #tpu.memory_space<vmem>>, %arg3: memref<16x1xf32, #tpu.memory_space<vmem>>, %arg4: memref<1x16x64xf32, #tpu.memory_space<vmem>>) attributes {dimension_semantics = [#tpu.dimension_semantics<parallel>], iteration_bounds = array<i64: 2>, scalar_prefetch = 0 : i64, scratch_operands = 0 : i64, tpu.core_type = #tpu.core_type<tc>, window_params = [{transform_indices = @transform_0, window_bounds = array<i64: 1, 128, 64>}, {pipeline_mode = #tpu.pipeline_mode<synchronous>, transform_indices = @transform_1, window_bounds = array<i64: 16, 128>}, {pipeline_mode = #tpu.pipeline_mode<synchronous>, transform_indices = @transform_2, window_bounds = array<i64: 16, 1>}, {transform_indices = @transform_3, window_bounds = array<i64: 1, 16, 64>}]} {
    %c0 = arith.constant 0 : index
    %c0_0 = arith.constant 0 : index
    %0 = vector.load %arg2[%c0, %c0_0] : memref<16x128xf32, #tpu.memory_space<vmem>>, vector<16x128xf32>
    %c0_1 = arith.constant 0 : index
    %c0_2 = arith.constant 0 : index
    %1 = vector.load %arg3[%c0_1, %c0_2] : memref<16x1xf32, #tpu.memory_space<vmem>>, vector<16x1xf32>
    %c0_3 = arith.constant 0 : index
    %c0_4 = arith.constant 0 : index
    %c0_5 = arith.constant 0 : index
    %2 = vector.load %arg1[%c0_3, %c0_4, %c0_5] : memref<1x128x64xf32, #tpu.memory_space<vmem>>, vector<1x128x64xf32>
    %3 = vector.shape_cast %2 : vector<1x128x64xf32> to vector<128x64xf32>
    %cst = arith.constant dense<0.000000e+00> : vector<16x64xf32>
    %4 = tpu.matmul %0, %3, %cst {dimension_numbers = #tpu.dot_dimension_numbers<[1], [0], [0], [1], [0, 0, 1, 1], [], []>} : vector<16x128xf32>, vector<128x64xf32>, vector<16x64xf32> -> vector<16x64xf32>
    %5 = vector.broadcast %1 : vector<16x1xf32> to vector<16x64xf32>
    %6 = arith.addf %4, %5 : vector<16x64xf32>
    %c0_6 = arith.constant 0 : index
    %c0_7 = arith.constant 0 : index
    %c0_8 = arith.constant 0 : index
    %7 = vector.load %arg4[%c0_6, %c0_7, %c0_8] : memref<1x16x64xf32, #tpu.memory_space<vmem>>, vector<1x16x64xf32>
    %8 = vector.shape_cast %7 : vector<1x16x64xf32> to vector<16x64xf32>
    %9 = vector.shape_cast %6 : vector<16x64xf32> to vector<1x16x64xf32>
    tpu.vector_store %arg4[%c0_6, %c0_7, %c0_8], %9 {strides = array<i32>} : memref<1x16x64xf32, #tpu.memory_space<vmem>>, vector<1x16x64xf32>,
    return
  }
  func.func @transform_0(%arg0: i32) -> (i32, i32, i32) {
    %c0_i32 = arith.constant 0 : i32
    %c0_i32_0 = arith.constant 0 : i32
    %c0_i32_1 = arith.constant 0 : i32
    return %arg0, %c0_i32, %c0_i32_0 : i32, i32, i32
  }
  func.func @transform_1(%arg0: i32) -> (i32, i32) {
    %c0_i32 = arith.constant 0 : i32
    %c0_i32_0 = arith.constant 0 : i32
    %c0_i32_1 = arith.constant 0 : i32
    return %c0_i32, %c0_i32_0 : i32, i32
  }
  func.func @transform_2(%arg0: i32) -> (i32, i32) {
    %c0_i32 = arith.constant 0 : i32
    %c0_i32_0 = arith.constant 0 : i32
    %c0_i32_1 = arith.constant 0 : i32
    return %c0_i32, %c0_i32_0 : i32, i32
  }
  func.func @transform_3(%arg0: i32) -> (i32, i32, i32) {
    %c0_i32 = arith.constant 0 : i32
    %c0_i32_0 = arith.constant 0 : i32
    %c0_i32_1 = arith.constant 0 : i32
    return %arg0, %c0_i32, %c0_i32_0 : i32, i32, i32
  }
}

</mosaic_0001>

<bundles_post_ra>
// kernel: tpu_custom_call.1
= control target key start
LH: loop header
LB: loop body
LE: loop exit
PB: predicated region body
PF: predicated region fallthrough
CT: control target
= control target key end

     0   :  { %8 = vsyncpa [#allocation3], 0  ;;  %s578_s0 = inlined_call_operand.vmem [shape: f32[2,128,64], index: 0, kind: input, shape index: {}]   ;;  %s579_s1 = inlined_call_operand.vmem [shape: f32[16,128], index: 1, kind: input, shape index: {}]   ;;  %s580_s2 = inlined_call_operand.vmem [shape: f32[16,1], index: 2, kind: input, shape index: {}]   ;;  %s581_s3 = inlined_call_operand.hbm [shape: f32[2,16,64], index: 3, kind: output, shape index: {}]  }
   0x1   :  { %10 = vsyncpa [#allocation3 + $0x1], 0  ;;  %s463_s12 = smov 0   ;;  %s465_s13 = smov 0  }
   0x2   :  { %s467_s14 = smov 0   ;;  %s469_s15 = smov 0  }
   0x3 LB: > { %s484_s16 = sadd.s32 4294967295, %s438_s15   ;;  %s303_s17 = sadd.s32 4294967294, %s438_s15   ;;  %s438_s15 = sphi %s469_s15, %s587_s15   ;;  %s434_s14 = sphi %s467_s14, %s586_s14   ;;  %s430_s13 = sphi %s465_s13, %s585_s13   ;;  %s426_s12 = sphi %s463_s12, %s584_s12  }
   0x4   : > { %s488_s18 = sadd.s32 1, %s438_s15   ;;  %s91_s19 = sadd.s32 1, %s434_s14 }
   0x5   : > { %s88_s20 = ssub.s32 %s438_s15, %s488_s18  ;;  %p101_p0 = scmp.ne.s32.totalorder %s434_s14, %s430_s13 }
   0x6   : > { %p89_p1 = scmp.eq.s32.totalorder %s88_s20, 0  ;;  %p102_p2 = scmp.eq.s32.totalorder %s484_s16, 1 }
   0x7   : > { %p107_p3 = scmp.ne.s32.totalorder %s430_s13, %s426_s12  ;;  %p108_p4 = scmp.eq.s32.totalorder %s303_s17, 1 }
   0x8   : > { %s499_s21 = scalar_select %p89_p1, %s434_s14, %s91_s19  }
   0x9   : > { %p501_p5 = por %p102_p2, %p101_p0  ;;  %p505_p6 = por %p108_p4, %p107_p3 }
   0xa   : > { %p306_p7 = scmp.ge.s32.totalorder %s438_s15, 1  ;;  %p140_p8 = scmp.lt.s32.totalorder %s438_s15, 3 }
   0xc   : > { %p141_p9 = pnand %p306_p7, %p140_p8 }
   0xd   : > { %p164_p10 = scmp.lt.s32.totalorder (!%p141_p9), %s484_s16, 1  ;;  %s161_s10 = sand.u32 (!%p141_p9), 1, %s430_s13  }
   0xe   : > { %144 = sbr.rel (%p141_p9) target bundleno = 188 (0xbc), region = 32  ;;  %s307_s11 = sshll.u32 (!%p141_p9), %s161_s10, 4 }
   0xf   : > { %s316_s17 = sshll.u32 (!%p141_p9), %s484_s16, 4  ;;  %s163_s25 = scalar_lea.vmem (!%p141_p9), [#allocation2], %s307_s11 }
  0x10   : > { %s237_s24 = scalar_lea.hbm (!%p141_p9), %s581_s3, %s316_s17  ;;  %s226_s28 = scalar_lea.sflag (!%p141_p9), [#allocation3], %s161_s10 }
  0x11   : > { %s396_s5 = scalar_lea.hbm (!%p141_p9), %s581_s3, 32 }
  0x13   : > { %v171_v0 = vld [vmem:[%s580_s2] sm:$0xff]  ;;  %v440_v1 = vmov 0   ;;  %s165_s26 = scalar_select %p164_p10, %s484_s16, 1  ;;  %v172_v6 = vld [vmem:[%s580_s2 + $0x8] sm:$0xff]  ;;  %vm222_vm0 = vcmask 523264  }
  0x14   : > { %375 = vset.pattern.permute.xlu0 %v440_v1  ;;  %v169_v19 = vld [vmem:[%s579_s1] sm:$0xff]  ;;  %v170_v20 = vld [vmem:[%s579_s1 + $0x8] sm:$0xff] }
  0x15   : > { %191 = vperm.xlu0 %375, %v171_v0   ;;  %s315_s27 = sshll.u32 %s165_s26, 7  ;;  %s238_s26 = sshll.u32 %s163_s25, 4  ;;  %s239_s26 = int_to_ptr.vmem [resolvable:$true] %s238_s26 }
  0x16   : > { %s519_s30 = scalar_lea.vmem %s578_s0, %s315_s27  ;;  %s240_s27 = sshll.u32 %s237_s24, 4  ;;  %s241_s27 = int_to_ptr.hbm [resolvable:$true] %s240_s27 }
  0x17   : > { %v188_v2 = vld [vmem:[%s519_s30 + $0x78] sm:$0xff]  ;;  %v187_v3 = vld [vmem:[%s519_s30 + $0x70] sm:$0xff]  ;;  %v186_v4 = vld [vmem:[%s519_s30 + $0x68] sm:$0xff]  ;;  %s390_s16 = sshra.s32 %s241_s27, 4  ;;  %s391_s16 = int_to_ptr.hbm [resolvable:$true] %s390_s16 }
  0x18   : > { %199 = vmatpush.msra.mxu0 %v188_v2  ;;  %317 = vmatpush.msra.mxu1 %v188_v2  ;;  %v185_v5 = vld [vmem:[%s519_s30 + $0x60] sm:$0xff]  ;;  %v184_v7 = vld [vmem:[%s519_s30 + $0x58] sm:$0xff]  ;;  %v183_v8 = vld [vmem:[%s519_s30 + $0x50] sm:$0xff]  ;;  %s392_s29 = scalar_lea.hbm %s391_s16, 16  ;;  %p397_p0 = scmp.lt.s32.totalorder %s391_s16, %s581_s3 }
  0x19   : > { %v182_v9 = vld [vmem:[%s519_s30 + $0x48] sm:$0xff]  ;;  %v181_v10 = vld [vmem:[%s519_s30 + $0x40] sm:$0xff]  ;;  %v180_v11 = vld [vmem:[%s519_s30 + $0x38] sm:$0xff]  ;;  %p393_p11 = scmp.ne.s32.totalorder %s391_s16, %s392_s29  ;;  %p398_p1 = scmp.lt.s32.totalorder %s396_s5, %s392_s29 }
  0x1a   : > { %200 = vmatpush.msra.mxu0 %v187_v3  ;;  %318 = vmatpush.msra.mxu1 %v187_v3  ;;  %v179_v12 = vld [vmem:[%s519_s30 + $0x30] sm:$0xff]  ;;  %v178_v13 = vld [vmem:[%s519_s30 + $0x28] sm:$0xff]  ;;  %v177_v14 = vld [vmem:[%s519_s30 + $0x20] sm:$0xff] }
  0x1b   : > { %v176_v15 = vld [vmem:[%s519_s30 + $0x18] sm:$0xff]  ;;  %v175_v16 = vld [vmem:[%s519_s30 + $0x10] sm:$0xff]  ;;  %v174_v17 = vld [vmem:[%s519_s30 + $0x8] sm:$0xff]  ;;  %p394_p12 = pnand %p393_p11, %p501_p5  ;;  %p399_p2 = por %p398_p1, %p397_p0 }
  0x1c   : > { %201 = vmatpush.msra.mxu0 %v186_v4  ;;  %319 = vmatpush.msra.mxu1 %v186_v4  ;;  %v173_v18 = vld [vmem:[%s519_s30] sm:$0xff] }
  0x1d   : > { %196 = vperm.xlu0 %375, %v172_v6   ;;  %p395_p13 = pneg %p394_p12 }
  0x1e   : > { %202 = vmatpush.msra.mxu0 %v185_v5  ;;  %320 = vmatpush.msra.mxu1 %v185_v5 }
  0x1f   : > { %p400_p3 = pnand %p399_p2, %p395_p13 }
  0x20   : > { %203 = vmatpush.msra.mxu0 %v184_v7  ;;  %321 = vmatpush.msra.mxu1 %v184_v7 }
  0x22   : > { %204 = vmatpush.msra.mxu0 %v183_v8  ;;  %322 = vmatpush.msra.mxu1 %v183_v8 }
  0x24   : > { %205 = vmatpush.msra.mxu0 %v182_v9  ;;  %323 = vmatpush.msra.mxu1 %v182_v9 }
  0x26   : > { %206 = vmatpush.msra.mxu0 %v181_v10  ;;  %324 = vmatpush.msra.mxu1 %v181_v10 }
  0x28   : > { %207 = vmatpush.msra.mxu0 %v180_v11  ;;  %325 = vmatpush.msra.mxu1 %v180_v11 }
  0x2a   : > { %208 = vmatpush.msra.mxu0 %v179_v12  ;;  %326 = vmatpush.msra.mxu1 %v179_v12 }
  0x2c   : > { %209 = vmatpush.msra.mxu0 %v178_v13  ;;  %327 = vmatpush.msra.mxu1 %v178_v13 }
  0x2e   : > { %210 = vmatpush.msra.mxu0 %v177_v14  ;;  %328 = vmatpush.msra.mxu1 %v177_v14 }
  0x30   : > { %211 = vmatpush.msra.mxu0 %v176_v15  ;;  %329 = vmatpush.msra.mxu1 %v176_v15 }
  0x32   : > { %212 = vmatpush.msra.mxu0 %v175_v16  ;;  %330 = vmatpush.msra.mxu1 %v175_v16 }
  0x34   : > { %213 = vmatpush.msra.mxu0 %v174_v17  ;;  %331 = vmatpush.msra.mxu1 %v174_v17 }
  0x36   : > { %214 = vmatpush.msra.mxu0 %v173_v18  ;;  %332 = vmatpush.msra.mxu1 %v173_v18 }
  0x37   : > { %215 = vmatmul.f32.vlgmr.msra.gmra.mxu0 %v169_v19  ;;  %218 = vmatmul.f32.vlgmr.msra.gmra.mxu1 %v170_v20 }
  0x87   : > { %v192_v21 = vpop.permute.xlu0 %191 }
  0x8f   : > { %v197_v22 = vpop.permute.xlu0 %196 }
  0xb4   : > { %v216_v23 = vpop.f32.mrf.mxu0  ;;  %v219_v24 = vpop.f32.mrf.mxu1 }
  0xb5   : > { %v217_v25 = vadd.f32 %v216_v23, %v192_v21  ;;  %v220_v26 = vadd.f32 %v219_v24, %v197_v22 }
  0xb7   : > { %223 = vst.msk [vmem:[%s163_s25] sm:$0xff] %vm222_vm0, %v217_v25 }
  0xb8   : > { %224 = vst.msk [vmem:[%s163_s25 + $0x8] sm:$0xff] %vm222_vm0, %v220_v26 }
  0xb9   : > { %403 = shalt.err (!%p400_p3)
}
  0xba   : > { %s441_s8 = smov 128   ;;  %s442_s9 = smov 8  }
  0xbb   : > { %333 = dma.vmem_to_hbm [thread:$0]  (%p501_p5), %s239_s26, 256, %s241_s27, %s226_s28, %s441_s8, %s441_s8, %s442_s9  }
  0xbc PF: > { %p339_p4 = scmp.ge.s32.totalorder %s438_s15, 2  ;;  %s255_s10 = sand.u32 1, %s426_s12  }
  0xbd   : > { %s256_s11 = scalar_lea.sflag [#allocation3], %s255_s10 }
  0xbe   : > { %p336_p7 = pnand %p339_p4, %p505_p6 }
  0xc0   : > { %p337_p8 = pneg %p336_p7 }
  0xc2   : > { %421 = dma.done.wait (%p337_p8), %s256_s11, 256  }
  0xc3   : > { %423 = vsyncadd (%p337_p8), %s256_s11, 4294967040  ;;  %p13_p9 = scmp.ge.s32.totalorder %s488_s18, 4   ;;  %s584_s12 = smov %s430_s13 }
  0xc4   : > { %s585_s13 = smov %s434_s14  ;;  %s586_s14 = smov %s499_s21 }
  0xc5   : > { %s587_s15 = smov %s488_s18  ;;  %15 = sbr.rel (!%p13_p9) target bundleno = 3 (0x3), region = 67 }
  0xca   :  { %262 = vsyncpa [#allocation3], 1 }
  0xcb   :  { %264 = vsyncpa [#allocation3 + $0x1], 1 }

</bundles_post_ra>
